<compile_context>
chip_gen: v5e
topology: v5e:2x2
jax: 0.10.0
libtpu: 0.0.40
codegen_flags: <defaults>
</compile_context>

<pallas_src>
import math
import functools

import jax
import jax.numpy as jnp
from jax import lax
from jax.experimental import pallas as pl
from jax.experimental.pallas import tpu as pltpu


def _round_up(x: int, m: int) -> int:
    return ((x + m - 1) // m) * m


def _embed_onehot_kernel(ids_ref, emb_ref, out_ref, acc_ref, *, scale):
    """One grid step = (one token tile) x (one vocab tile).

    ids_ref : (TILE_TOK, 1) int32   token ids of this token tile
    emb_ref : (V_TILE, D)           current vocab tile (resident if V_TILE == V)
    out_ref : (TILE_TOK, D)         output block (revisited across vocab axis)
    acc_ref : (TILE_TOK, D) f32     VMEM accumulator scratch
    """
    vi = pl.program_id(1)

    @pl.when(vi == 0)
    def _init():
        acc_ref[...] = jnp.zeros_like(acc_ref)

    ids = ids_ref[...]                                    # (T, 1) int32
    t = ids.shape[0]
    v_tile = emb_ref.shape[0]
    cols = lax.broadcasted_iota(jnp.int32, (t, v_tile), 1) + vi * v_tile
    one_hot = (ids == cols).astype(emb_ref.dtype)         # (T, V_TILE)
    # Gather on the MXU: exactly one 1.0 per row selects that table row.
    acc_ref[...] += jnp.dot(one_hot, emb_ref[...],
                            preferred_element_type=jnp.float32)

    @pl.when(vi == pl.num_programs(1) - 1)
    def _finalize():
        out_ref[...] = (acc_ref[...] * scale).astype(out_ref.dtype)


def input_embedding(token_ids: jax.Array,
                    emb_table: jax.Array,
                    *,
                    tile_tok: int = 256,
                    table_vmem_budget: int = 4 * 1024 * 1024) -> jax.Array:
    """token_ids: (B, S) int -> (B, S, D) = emb_table[token_ids] * sqrt(D)."""
    B, S = token_ids.shape
    V, D = emb_table.shape
    n_tok = B * S
    scale = math.sqrt(D)

    # --- token tiling: multiple of 8 sublanes, <= requested tile ---
    tile_tok = min(tile_tok, _round_up(n_tok, 8))
    tile_tok = _round_up(tile_tok, 8)
    n_tok_pad = _round_up(n_tok, tile_tok)

    flat_ids = token_ids.reshape(n_tok).astype(jnp.int32)
    if n_tok_pad != n_tok:
        flat_ids = jnp.pad(flat_ids, (0, n_tok_pad - n_tok))  # pad with id 0
    ids2d = flat_ids.reshape(n_tok_pad, 1)

    # --- vocab tiling: whole table resident in VMEM if it fits the budget ---
    bytes_per_row = D * emb_table.dtype.itemsize
    max_rows = max(8, ((table_vmem_budget // bytes_per_row) // 8) * 8)
    if V <= max_rows:
        v_tile = V
        v_pad = V
        emb = emb_table
    else:
        v_tile = max_rows
        v_pad = _round_up(V, v_tile)
        emb = jnp.pad(emb_table, ((0, v_pad - V), (0, 0)))   # zero rows: no effect

    grid = (n_tok_pad // tile_tok, v_pad // v_tile)

    out = pl.pallas_call(
        functools.partial(_embed_onehot_kernel, scale=scale),
        out_shape=jax.ShapeDtypeStruct((n_tok_pad, D), emb_table.dtype),
        grid_spec=pltpu.PrefetchScalarGridSpec(
            num_scalar_prefetch=0,
            grid=grid,
            in_specs=[
                # token ids for this token tile
                pl.BlockSpec((tile_tok, 1), lambda ti, vi: (ti, 0)),
                # embedding table tile (constant over token axis -> resident)
                pl.BlockSpec((v_tile, D), lambda ti, vi: (vi, 0)),
            ],
            out_specs=pl.BlockSpec((tile_tok, D), lambda ti, vi: (ti, 0)),
            scratch_shapes=[pltpu.VMEM((tile_tok, D), jnp.float32)],
        ),
        compiler_params=pltpu.CompilerParams(
            dimension_semantics=("parallel", "arbitrary"),
        ),
    )(ids2d, emb)

    if n_tok_pad != n_tok:
        out = out[:n_tok]
    return out.reshape(B, S, D)


if __name__ == "__main__":
    d_model = 128
    vocab_size = 64
    B, S = 2, 8

    key = jax.random.PRNGKey(0)
    k_emb, k_ids, k_emb2, k_ids2 = jax.random.split(key, 4)

    # nn.Embedding(vocab_size, d_model).weight ~ N(0, 1), deterministic init.
    emb_table = jax.random.normal(k_emb, (vocab_size, d_model), dtype=jnp.float32)
    token_ids = jax.random.randint(k_ids, (B, S), 0, vocab_size, dtype=jnp.int32)

    out = input_embedding(token_ids, emb_table)
    out = jax.block_until_ready(out)

    ref = emb_table[token_ids] * math.sqrt(d_model)
    assert out.shape == (B, S, d_model)
    assert out.dtype == jnp.float32
    # Tolerance leaves headroom for reduced-precision MXU passes in the one-hot
    # gather matmul; a wrong gathered row would be off by O(10).
    assert jnp.allclose(out, ref, atol=5e-2, rtol=2e-2), \
        float(jnp.max(jnp.abs(out - ref)))

    # Exercise multi-tile paths: several token tiles, token padding, vocab
    # tiling + vocab padding (small forced VMEM budget), accumulator path.
    B2, S2, V2, D2 = 4, 50, 60, 128
    emb2 = jax.random.normal(k_emb2, (V2, D2), dtype=jnp.float32)
    ids2 = jax.random.randint(k_ids2, (B2, S2), 0, V2, dtype=jnp.int32)
    out2 = jax.block_until_ready(
        input_embedding(ids2, emb2, tile_tok=64, table_vmem_budget=8 * 1024))
    ref2 = emb2[ids2] * math.sqrt(D2)
    assert out2.shape == (B2, S2, D2)
    assert jnp.allclose(out2, ref2, atol=5e-2, rtol=2e-2), \
        float(jnp.max(jnp.abs(out2 - ref2)))

    print("KERNEL_OK")
</pallas_src>

<mosaic_0001>
module attributes {stable_mosaic.version = 11 : i64} {
  func.func @_embed_onehot_kernel(%arg0: i32, %arg1: i32, %arg2: memref<16x1xi32, #tpu.memory_space<vmem>>, %arg3: memref<64x128xf32, #tpu.memory_space<vmem>>, %arg4: memref<16x128xf32, #tpu.memory_space<vmem>>, %arg5: memref<16x128xf32, #tpu.memory_space<vmem>>) attributes {dimension_semantics = [#tpu.dimension_semantics<parallel>, #tpu.dimension_semantics<arbitrary>], iteration_bounds = array<i64: 1, 1>, scalar_prefetch = 0 : i64, scratch_operands = 1 : i64, tpu.core_type = #tpu.core_type<tc>, window_params = [{transform_indices = @transform_0, window_bounds = array<i64: 16, 1>}, {transform_indices = @transform_1, window_bounds = array<i64: 64, 128>}, {transform_indices = @transform_2, window_bounds = array<i64: 16, 128>}]} {
    %c0_i32 = arith.constant 0 : i32
    %0 = arith.cmpi eq, %arg1, %c0_i32 : i32
    %1 = arith.extui %0 : i1 to i32
    %c0_i32_0 = arith.constant 0 : i32
    %2 = arith.cmpi ne, %1, %c0_i32_0 : i32
    scf.if %2 {
      %cst_10 = arith.constant 0.000000e+00 : f32
      %20 = vector.broadcast %cst_10 : f32 to vector<16x128xf32>
      %c0_11 = arith.constant 0 : index
      %c0_12 = arith.constant 0 : index
      %21 = vector.load %arg5[%c0_11, %c0_12] : memref<16x128xf32, #tpu.memory_space<vmem>>, vector<16x128xf32>
      tpu.vector_store %arg5[%c0_11, %c0_12], %20 {strides = array<i32>} : memref<16x128xf32, #tpu.memory_space<vmem>>, vector<16x128xf32>,
    } else {
    }
    %c0 = arith.constant 0 : index
    %c0_1 = arith.constant 0 : index
    %3 = vector.load %arg2[%c0, %c0_1] : memref<16x1xi32, #tpu.memory_space<vmem>>, vector<16x1xi32>
    %4 = tpu.iota {dimensions = array<i32: 1>} : vector<16x64xi32>
    %c64_i32 = arith.constant 64 : i32
    %5 = arith.muli %arg1, %c64_i32 : i32
    %6 = vector.broadcast %5 : i32 to vector<16x64xi32>
    %7 = arith.addi %4, %6 : vector<16x64xi32>
    %8 = vector.broadcast %3 : vector<16x1xi32> to vector<16x64xi32>
    %9 = arith.cmpi eq, %8, %7 : vector<16x64xi32>
    %10 = arith.extui %9 : vector<16x64xi1> to vector<16x64xi32>
    %11 = arith.sitofp %10 : vector<16x64xi32> to vector<16x64xf32>
    %c0_2 = arith.constant 0 : index
    %c0_3 = arith.constant 0 : index
    %12 = vector.load %arg5[%c0_2, %c0_3] : memref<16x128xf32, #tpu.memory_space<vmem>>, vector<16x128xf32>
    %c0_4 = arith.constant 0 : index
    %c0_5 = arith.constant 0 : index
    %13 = vector.load %arg3[%c0_4, %c0_5] : memref<64x128xf32, #tpu.memory_space<vmem>>, vector<64x128xf32>
    %cst = arith.constant dense<0.000000e+00> : vector<16x128xf32>
    %14 = tpu.matmul %11, %13, %cst {dimension_numbers = #tpu.dot_dimension_numbers<[1], [0], [0], [1], [0, 0, 1, 1], [], []>} : vector<16x64xf32>, vector<64x128xf32>, vector<16x128xf32> -> vector<16x128xf32>
    %15 = arith.addf %12, %14 : vector<16x128xf32>
    %c0_6 = arith.constant 0 : index
    %c0_7 = arith.constant 0 : index
    %16 = vector.load %arg5[%c0_6, %c0_7] : memref<16x128xf32, #tpu.memory_space<vmem>>, vector<16x128xf32>
    tpu.vector_store %arg5[%c0_6, %c0_7], %15 {strides = array<i32>} : memref<16x128xf32, #tpu.memory_space<vmem>>, vector<16x128xf32>,
    %c0_i32_8 = arith.constant 0 : i32
    %17 = arith.cmpi eq, %arg1, %c0_i32_8 : i32
    %18 = arith.extui %17 : i1 to i32
    %c0_i32_9 = arith.constant 0 : i32
    %19 = arith.cmpi ne, %18, %c0_i32_9 : i32
    scf.if %19 {
      %c0_10 = arith.constant 0 : index
      %c0_11 = arith.constant 0 : index
      %20 = vector.load %arg5[%c0_10, %c0_11] : memref<16x128xf32, #tpu.memory_space<vmem>>, vector<16x128xf32>
      %cst_12 = arith.constant 11.3137083 : f32
      %21 = vector.broadcast %cst_12 : f32 to vector<16x128xf32>
      %22 = arith.mulf %20, %21 : vector<16x128xf32>
      %c0_13 = arith.constant 0 : index
      %c0_14 = arith.constant 0 : index
      %23 = vector.load %arg4[%c0_13, %c0_14] : memref<16x128xf32, #tpu.memory_space<vmem>>, vector<16x128xf32>
      tpu.vector_store %arg4[%c0_13, %c0_14], %22 {strides = array<i32>} : memref<16x128xf32, #tpu.memory_space<vmem>>, vector<16x128xf32>,
    } else {
    }
    return
  }
  func.func @transform_0(%arg0: i32, %arg1: i32) -> (i32, i32) {
    %c0_i32 = arith.constant 0 : i32
    %c0_i32_0 = arith.constant 0 : i32
    return %arg0, %c0_i32 : i32, i32
  }
  func.func @transform_1(%arg0: i32, %arg1: i32) -> (i32, i32) {
    %c0_i32 = arith.constant 0 : i32
    %c0_i32_0 = arith.constant 0 : i32
    return %arg1, %c0_i32 : i32, i32
  }
  func.func @transform_2(%arg0: i32, %arg1: i32) -> (i32, i32) {
    %c0_i32 = arith.constant 0 : i32
    %c0_i32_0 = arith.constant 0 : i32
    return %arg0, %c0_i32 : i32, i32
  }
}

</mosaic_0001>

<bundles_post_ra>
// kernel: tpu_custom_call.1
= control target key start
LH: loop header
LB: loop body
LE: loop exit
PB: predicated region body
PF: predicated region fallthrough
CT: control target
= control target key end

     0   :  { %7 = vsyncpa [#allocation4], 0  ;;  %s235_s0 = inlined_call_operand.vmem [shape: s32[16,1], index: 0, kind: input, shape index: {}]   ;;  %s236_s1 = inlined_call_operand.hbm [shape: f32[64,128], index: 1, kind: input, shape index: {}]   ;;  %s237_s2 = inlined_call_operand.hbm [shape: f32[16,128], index: 2, kind: output, shape index: {}]  }
   0x1   :  { %8 = vsyncpa [#allocation5], 0  ;;  %s15_s11 = sshll.u32 %s236_s1, 4  ;;  %s196_s12 = smov [#allocation3]   ;;  %s16_s11 = int_to_ptr.hbm [resolvable:$true] %s15_s11 }
   0x2   :  { %s17_s13 = sshll.u32 %s196_s12, 4  ;;  %s197_s14 = smov 128   ;;  %s18_s13 = int_to_ptr.vmem [resolvable:$true] %s17_s13 }
   0x3   :  { %s198_s15 = smov 8  }
   0x4   :  { %23 = dma.hbm_to_vmem [thread:$0]  %s16_s11, 1024, %s18_s13, [#allocation4], %s197_s14, %s197_s14, %s198_s15  }
   0x5   :  { %192 = dma.done.wait [#allocation4], 1024  }
   0x6   :  { %193 = vsyncadd [#allocation4], 4294966272  ;;  %v199_v0 = vmov 0   ;;  %v34_v1 = vld [vmem:[%s235_s0] sm:$0xff]  ;;  %v62_v2 = vld [vmem:[#allocation3 + $0x38] sm:$0xff]  ;;  %v36_v11 = vlaneseq  ;;  %vm63_vm0 = vcmask 523264  }
   0x7   :  { %143 = vset.pattern.permute.xlu0 %v199_v0  ;;  %78 = vmatpush.msra.mxu0 %v62_v2  ;;  %v61_v3 = vld [vmem:[#allocation3 + $0x30] sm:$0xff]  ;;  %v60_v4 = vld [vmem:[#allocation3 + $0x28] sm:$0xff]  ;;  %v59_v5 = vld [vmem:[#allocation3 + $0x20] sm:$0xff]  ;;  %v200_v14 = vmov 0.0   ;;  %s112_s22 = sshll.u32 %s237_s2, 4  ;;  %s113_s22 = int_to_ptr.hbm [resolvable:$true] %s112_s22 }
   0x8   :  { %42 = vperm.xlu0 %143, %v34_v1   ;;  %129 = vmatpush.msra.mxu1 %v62_v2  ;;  %v35_v6 = vld [vmem:[%s235_s0 + $0x8] sm:$0xff]  ;;  %v58_v7 = vld [vmem:[#allocation3 + $0x18] sm:$0xff]  ;;  %v57_v8 = vld [vmem:[#allocation3 + $0x10] sm:$0xff]  ;;  %v37_v12 = vand.u32 127, %v36_v11  ;;  %s201_s0 = smov [#allocation6]  }
   0x9   :  { %79 = vmatpush.msra.mxu0 %v61_v3  ;;  %v56_v9 = vld [vmem:[#allocation3 + $0x8] sm:$0xff]  ;;  %v55_v10 = vld [vmem:[#allocation3] sm:$0xff]  ;;  %s110_s19 = sshll.u32 %s201_s0, 4  ;;  %s111_s19 = int_to_ptr.vmem [resolvable:$true] %s110_s19 }
   0xa   :  { %130 = vmatpush.msra.mxu1 %v61_v3 }
   0xb   :  { %80 = vmatpush.msra.mxu0 %v60_v4 }
   0xc   :  { %131 = vmatpush.msra.mxu1 %v60_v4 }
   0xd   :  { %81 = vmatpush.msra.mxu0 %v59_v5 }
   0xe   :  { %132 = vmatpush.msra.mxu1 %v59_v5 }
   0xf   :  { %82 = vmatpush.msra.mxu0 %v58_v7 }
  0x10   :  { %45 = vperm.xlu0 %143, %v35_v6   ;;  %133 = vmatpush.msra.mxu1 %v58_v7 }
  0x11   :  { %83 = vmatpush.msra.mxu0 %v57_v8 }
  0x12   :  { %134 = vmatpush.msra.mxu1 %v57_v8 }
  0x13   :  { %84 = vmatpush.msra.mxu0 %v56_v9 }
  0x14   :  { %135 = vmatpush.msra.mxu1 %v56_v9 }
  0x15   :  { %85 = vmatpush.msra.mxu0 %v55_v10 }
  0x16   :  { %136 = vmatpush.msra.mxu1 %v55_v10 }
  0x7a   :  { %v43_v13 = vpop.permute.xlu0 %42 }
  0x7b   :  { %vm47_vm1 = vcmp.eq.s32.totalorder %v43_v13, %v37_v12 }
  0x7c   :  { %v125_v15 = vsel %vm47_vm1, 1.0, %v200_v14 }
  0x7d   :  { %127 = vmatmul.msk.f32.vlgmr.msra.gmra.mxu0 %vm63_vm0, %v125_v15 }
  0x82   :  { %v46_v16 = vpop.permute.xlu0 %45 }
  0x83   :  { %vm48_vm2 = vcmp.eq.s32.totalorder %v46_v16, %v37_v12 }
  0x84   :  { %v126_v17 = vsel %vm48_vm2, 1.0, %v200_v14 }
  0x85   :  { %128 = vmatmul.msk.f32.vlgmr.msra.gmra.mxu1 %vm63_vm0, %v126_v17 }
  0xfa   :  { %v87_v18 = vpop.f32.mrf.mxu0 }
  0xfb   :  { %v102_v19 = vmul.f32 11.313708, %v87_v18 }
  0xfd   :  { %104 = vst [vmem:[#allocation6] sm:$0xff] %v102_v19 }
 0x102   :  { %v90_v20 = vpop.f32.mrf.mxu1 }
 0x103   :  { %v103_v21 = vmul.f32 11.313708, %v90_v20 }
 0x105   :  { %105 = vst [vmem:[#allocation6 + $0x8] sm:$0xff] %v103_v21 }
 0x106   :  { %118 = dma.vmem_to_hbm [thread:$0]  %s111_s19, 256, %s113_s22, [#allocation5], %s197_s14, %s197_s14, %s198_s15  }
 0x107   :  { %194 = dma.done.wait [#allocation5], 256  }
 0x108   :  { %195 = vsyncadd [#allocation5], 4294967040 }
 0x109   :  { %123 = vsyncpa [#allocation4], 1 }
 0x10a   :  { %124 = vsyncpa [#allocation5], 1 }

</bundles_post_ra>
